<compile_context>
chip_gen: v7x
topology: tpu7x:2x2x1
jax: 0.10.0
libtpu: 0.0.40
codegen_flags: <defaults>
</compile_context>

<pallas_src>
import functools

import jax
import jax.numpy as jnp
import numpy as np
from jax.experimental import pallas as pl
from jax.experimental.pallas import tpu as pltpu


def _ru(v, m):
    return (v + m - 1) // m * m


def _vmem_limit(est_bytes):
    # Explicit scoped-VMEM limit: enough for the estimate + headroom, but
    # never above 48 MiB (v7x has only 64 MiB physical VMEM per TC).
    return int(min(48 << 20, max(16 << 20, est_bytes + (4 << 20))))


# ---------------------------------------------------------------------------
# FUSED kernel: per-batch x resident, pooling + gating + mixing in one pass.
# ---------------------------------------------------------------------------
def _fused_kernel(w1_ref, b1_ref, w2_ref, b2_ref, scale_ref, shift_ref,
                  x_ref, o_ref, *, k):
    x = x_ref[...].astype(jnp.float32)                      # (C, L), full L resident
    # Channel pooling from the resident block (true L is static => exact mean,
    # no padded columns, no extra HBM pass).
    pool = jnp.mean(x, axis=-1, keepdims=True)               # (C, 1)

    # Conv1d(C, 4C, 1, groups=C) + ReLU -> per-channel hidden (C, 4).
    h = jnp.maximum(w1_ref[...] * pool + b1_ref[...], 0.0)

    # Conv1d(4C, C*C, 1, groups=C) as unrolled lane-dense (C, C) FMAs.
    scores = b2_ref[...]
    for j in range(w2_ref.shape[0]):
        scores = scores + w2_ref[j] * h[:, j:j + 1]

    # LayerNorm over the last dim (eps = 1e-5); temperature is pre-folded
    # into scale/shift host-side (kept in f32).
    mu = jnp.mean(scores, axis=-1, keepdims=True)
    var = jnp.mean((scores - mu) ** 2, axis=-1, keepdims=True)
    scores = (scores - mu) * jax.lax.rsqrt(var + 1e-5)
    scores = scores * scale_ref[...] + shift_ref[...]

    # Top-k threshold via k max-and-mask passes: O(k*C^2), lane-dense VPU.
    # TODO(synk): exact torch.topk tie-breaking (keeps exactly k on duplicate
    # scores) is not reproduced; measure-zero for continuous inputs.
    work = scores
    kth = jnp.max(work, axis=-1, keepdims=True)
    for _ in range(k - 1):
        work = jnp.where(work >= kth, -jnp.inf, work)
        kth = jnp.max(work, axis=-1, keepdims=True)
    masked = jnp.where(scores >= kth, scores, -jnp.inf)

    # Softmax over the last dim (f32).
    m = jnp.max(masked, axis=-1, keepdims=True)
    e = jnp.exp(masked - m)
    w = e / jnp.sum(e, axis=-1, keepdims=True)               # (C, C)

    # Mixing + residual.  (At C <= 16 the MXU pass is mostly padding, but the
    # kernel is DMA-bound so the dot is kept for clarity.)
    fused = jnp.dot(w, x, preferred_element_type=jnp.float32)
    o_ref[...] = (fused + x).astype(o_ref.dtype)


def _channel_moe_fused(x, w1r, b1r, w2n, b2r, scale, shift, k, est_bytes):
    B, C, L = x.shape
    n_hidden = w2n.shape[0]
    return pl.pallas_call(
        functools.partial(_fused_kernel, k=k),
        out_shape=jax.ShapeDtypeStruct((B, C, L), x.dtype),
        grid_spec=pltpu.PrefetchScalarGridSpec(
            num_scalar_prefetch=0,
            grid=(B,),
            in_specs=[
                pl.BlockSpec((C, n_hidden), lambda b: (0, 0)),           # w1r
                pl.BlockSpec((C, n_hidden), lambda b: (0, 0)),           # b1r
                pl.BlockSpec((n_hidden, C, C), lambda b: (0, 0, 0)),     # w2n
                pl.BlockSpec((C, C), lambda b: (0, 0)),                  # b2r
                pl.BlockSpec((1, C), lambda b: (0, 0)),                  # scale
                pl.BlockSpec((1, C), lambda b: (0, 0)),                  # shift
                # Full (C, L) block: no pad needed even when L % 128 != 0.
                pl.BlockSpec((pl.Squeezed(), C, L), lambda b: (b, 0, 0)),
            ],
            out_specs=pl.BlockSpec((pl.Squeezed(), C, L), lambda b: (b, 0, 0)),
        ),
        compiler_params=pltpu.CompilerParams(
            dimension_semantics=("parallel",),
            vmem_limit_bytes=_vmem_limit(est_bytes)),
    )(w1r, b1r, w2n, b2r, scale, shift, x)


# ---------------------------------------------------------------------------
# STREAMED kernel: gating hoisted to JAX, kernel only mixes (weights @ x + x).
# ---------------------------------------------------------------------------
def _mix_kernel(w_ref, x_ref, o_ref):
    x = x_ref[...].astype(jnp.float32)
    fused = jnp.dot(w_ref[...], x, preferred_element_type=jnp.float32)
    o_ref[...] = (fused + x).astype(o_ref.dtype)


def _channel_moe_streamed(x, w1r, b1r, w2n, b2r, gamma, beta, t, k, budget):
    B, C, L = x.shape
    f32 = jnp.float32

    # Gating is O(B*C^2), independent of L -> plain JAX.  The pool is one
    # extra HBM read of x in this (x-does-not-fit-VMEM) regime.
    # TODO(synk): fuse this pool into the producer of x to recover the
    # 2-pass roofline for very long sequences.
    pool = jnp.mean(x.astype(f32), axis=-1, keepdims=True)           # (B, C, 1)
    h = jax.nn.relu(w1r[None] * pool + b1r[None])                    # (B, C, 4)
    scores = jnp.einsum("jco,bcj->bco", w2n, h) + b2r[None]          # (B, C, C)
    mu = scores.mean(-1, keepdims=True)
    var = ((scores - mu) ** 2).mean(-1, keepdims=True)
    scores = (scores - mu) * jax.lax.rsqrt(var + 1e-5)
    scores = scores * gamma.reshape(1, 1, C) + beta.reshape(1, 1, C)
    scores = scores / t
    kth = jax.lax.top_k(scores, k)[0][..., -1:]
    masked = jnp.where(scores >= kth, scores, -jnp.inf)
    weights = jax.nn.softmax(masked, axis=-1).astype(f32)            # (B, C, C)

    # Tile L from the VMEM budget (x-in + out, double-buffered, lane-dense).
    LANE = 128
    itemsize = max(x.dtype.itemsize, 4)
    c_sub = _ru(C, 8)
    max_cols = max(LANE, budget // (4 * c_sub * itemsize))
    tile_l = min(_ru(L, LANE), (max_cols // LANE) * LANE)
    n_lt = -(-L // tile_l)          # cdiv: ragged tail handled by OOB masking

    est = 4 * c_sub * tile_l * itemsize + 2 * c_sub * _ru(C, LANE) * 4
    return pl.pallas_call(
        _mix_kernel,
        out_shape=jax.ShapeDtypeStruct((B, C, L), x.dtype),
        grid_spec=pltpu.PrefetchScalarGridSpec(
            num_scalar_prefetch=0,
            grid=(B, n_lt),
            in_specs=[
                pl.BlockSpec((pl.Squeezed(), C, C), lambda b, lt: (b, 0, 0)),
                pl.BlockSpec((pl.Squeezed(), C, tile_l), lambda b, lt: (b, 0, lt)),
            ],
            out_specs=pl.BlockSpec((pl.Squeezed(), C, tile_l),
                                   lambda b, lt: (b, 0, lt)),
        ),
        compiler_params=pltpu.CompilerParams(
            dimension_semantics=("parallel", "parallel"),   # 2-TC sharding on v7x
            vmem_limit_bytes=_vmem_limit(est)),
    )(weights, x)


# ---------------------------------------------------------------------------
# Public wrapper.
# ---------------------------------------------------------------------------
def channel_moe(x, w1, b1, w2, b2, gamma, beta, temp, *, k=4,
                vmem_budget_bytes=24 << 20):
    """ChannelMoE forward.  x: (B, C, L); params in squeezed PyTorch layouts:
    w1/b1: (4C,), w2: (C*C, 4), b2: (C*C,), gamma/beta: (C,), temp: (1,)."""
    B, C, L = x.shape
    f32 = jnp.float32
    n_hidden = w1.shape[0] // C
    k_eff = int(max(1, min(k, C)))

    # Host-side re-layout of the tiny gating parameters.
    w1r = w1.reshape(C, n_hidden).astype(f32)
    b1r = b1.reshape(C, n_hidden).astype(f32)
    w2n = jnp.transpose(w2.reshape(C, C, n_hidden), (2, 0, 1)).astype(f32)
    b2r = b2.reshape(C, C).astype(f32)
    t = jnp.asarray(temp, f32).reshape(())

    itemsize = max(x.dtype.itemsize, 4)
    c_sub = _ru(C, 8)
    c_lane = _ru(C, 128)
    # Estimated resident VMEM for the fused path: double-buffered x-in + out
    # slabs plus the (constant-index, still double-buffered) gating params.
    param_bytes = 2 * (n_hidden + 2) * c_sub * c_lane * 4 + (64 << 10)
    fused_bytes = 4 * c_sub * _ru(L, 128) * itemsize + param_bytes

    if fused_bytes <= vmem_budget_bytes:
        scale = (gamma.astype(f32) / t).reshape(1, C)   # temperature folded (f32)
        shift = (beta.astype(f32) / t).reshape(1, C)
        return _channel_moe_fused(x, w1r, b1r, w2n, b2r, scale, shift,
                                  k_eff, fused_bytes)
    return _channel_moe_streamed(x, w1r, b1r, w2n, b2r,
                                 gamma.astype(f32), beta.astype(f32), t,
                                 k_eff, vmem_budget_bytes)


# ---------------------------------------------------------------------------
# Pure-JAX reference mirroring the PyTorch forward.
# ---------------------------------------------------------------------------
def reference(x, w1, b1, w2, b2, gamma, beta, temp, *, k=4):
    B, C, L = x.shape
    pool = x.mean(-1, keepdims=True)                                 # (B, C, 1)
    w1r = w1.reshape(C, -1)
    b1r = b1.reshape(C, -1)
    h = jax.nn.relu(w1r[None] * pool + b1r[None])                    # (B, C, 4)
    w2r = w2.reshape(C, C, -1)
    b2r = b2.reshape(C, C)
    scores = jnp.einsum("coj,bcj->bco", w2r, h) + b2r[None]          # (B, C, C)
    mu = scores.mean(-1, keepdims=True)
    var = ((scores - mu) ** 2).mean(-1, keepdims=True)
    scores = (scores - mu) / jnp.sqrt(var + 1e-5)
    scores = scores * gamma.reshape(1, 1, -1) + beta.reshape(1, 1, -1)
    scores = scores / temp
    kth = jax.lax.top_k(scores, k)[0][..., -1:]
    masked = jnp.where(scores >= kth, scores, -jnp.inf)
    w = jax.nn.softmax(masked, axis=-1)
    fused = jnp.einsum("bco,bol->bcl", w, x)
    return fused + x


if __name__ == "__main__":
    key = jax.random.PRNGKey(0)
    k1, k2, k3, k4, kx1, kx2 = jax.random.split(key, 6)

    B, C, K = 2, 8, 4
    # Conv1d(C, 4C, 1, groups=C): weight (4C,1,1), kaiming fan_out = 4C
    w1 = jax.random.normal(k1, (4 * C,), jnp.float32) * jnp.sqrt(2.0 / (4 * C))
    b1 = (jax.random.uniform(k2, (4 * C,), jnp.float32) - 0.5) * 2.0
    # Conv1d(4C, C*C, 1, groups=C): weight (C*C,4,1), kaiming fan_out = C*C
    w2 = jax.random.normal(k3, (C * C, 4), jnp.float32) * jnp.sqrt(2.0 / (C * C))
    b2 = (jax.random.uniform(k4, (C * C,), jnp.float32) - 0.5) * 2.0 / jnp.sqrt(4.0)
    gamma = jnp.ones((C,), jnp.float32)            # LayerNorm weight init
    beta = jnp.zeros((C,), jnp.float32)            # LayerNorm bias init
    temp = jnp.full((1,), 0.1, jnp.float32)        # temperature = 0.1

    # 1) Fused path: per-batch x resident in VMEM, pooling computed in-kernel,
    #    no host-side pad/slice even though L = 160 is not a multiple of 128.
    L1 = 160
    x1 = jax.random.normal(kx1, (B, C, L1), jnp.float32)
    out1 = jax.block_until_ready(
        channel_moe(x1, w1, b1, w2, b2, gamma, beta, temp, k=K))
    ref1 = reference(x1, w1, b1, w2, b2, gamma, beta, temp, k=K)
    np.testing.assert_allclose(np.asarray(out1), np.asarray(ref1),
                               rtol=1e-4, atol=1e-4)

    # 2) Streamed path (forced via a tiny VMEM budget): gating hoisted to
    #    plain JAX, L tiled (tile_l = 512, 2 tiles), both grid axes parallel.
    L2 = 1024
    x2 = jax.random.normal(kx2, (B, C, L2), jnp.float32)
    out2 = jax.block_until_ready(
        channel_moe(x2, w1, b1, w2, b2, gamma, beta, temp, k=3,
                    vmem_budget_bytes=64 << 10))
    ref2 = reference(x2, w1, b1, w2, b2, gamma, beta, temp, k=3)
    np.testing.assert_allclose(np.asarray(out2), np.asarray(ref2),
                               rtol=1e-4, atol=1e-4)

    print("KERNEL_OK")
</pallas_src>

<mosaic_0001>
module attributes {stable_mosaic.version = 11 : i64} {
  func.func @_fused_kernel(%arg0: i32, %arg1: memref<8x4xf32, #tpu.memory_space<vmem>>, %arg2: memref<8x4xf32, #tpu.memory_space<vmem>>, %arg3: memref<4x8x8xf32, #tpu.memory_space<vmem>>, %arg4: memref<8x8xf32, #tpu.memory_space<vmem>>, %arg5: memref<1x8xf32, #tpu.memory_space<vmem>>, %arg6: memref<1x8xf32, #tpu.memory_space<vmem>>, %arg7: memref<1x8x160xf32, #tpu.memory_space<vmem>>, %arg8: memref<1x8x160xf32, #tpu.memory_space<vmem>>) attributes {dimension_semantics = [#tpu.dimension_semantics<parallel>], iteration_bounds = array<i64: 2>, scalar_prefetch = 0 : i64, scratch_operands = 0 : i64, tpu.core_type = #tpu.core_type<tc>, window_params = [{pipeline_mode = #tpu.pipeline_mode<synchronous>, transform_indices = @transform_0, window_bounds = array<i64: 8, 4>}, {pipeline_mode = #tpu.pipeline_mode<synchronous>, transform_indices = @transform_1, window_bounds = array<i64: 8, 4>}, {pipeline_mode = #tpu.pipeline_mode<synchronous>, transform_indices = @transform_2, window_bounds = array<i64: 4, 8, 8>}, {pipeline_mode = #tpu.pipeline_mode<synchronous>, transform_indices = @transform_3, window_bounds = array<i64: 8, 8>}, {pipeline_mode = #tpu.pipeline_mode<synchronous>, transform_indices = @transform_4, window_bounds = array<i64: 1, 8>}, {pipeline_mode = #tpu.pipeline_mode<synchronous>, transform_indices = @transform_5, window_bounds = array<i64: 1, 8>}, {transform_indices = @transform_6, window_bounds = array<i64: 1, 8, 160>}, {transform_indices = @transform_7, window_bounds = array<i64: 1, 8, 160>}]} {
    %c0 = arith.constant 0 : index
    %c0_0 = arith.constant 0 : index
    %c0_1 = arith.constant 0 : index
    %0 = vector.load %arg7[%c0, %c0_0, %c0_1] : memref<1x8x160xf32, #tpu.memory_space<vmem>>, vector<1x8x160xf32>
    %1 = vector.shape_cast %0 : vector<1x8x160xf32> to vector<8x160xf32>
    %cst = arith.constant dense<0.000000e+00> : vector<8xf32>
    %2 = vector.multi_reduction <add>, %1, %cst [1] : vector<8x160xf32> to vector<8xf32>
    %3 = vector.shape_cast %2 : vector<8xf32> to vector<8x1xf32>
    %cst_2 = arith.constant 1.600000e+02 : f32
    %4 = vector.broadcast %cst_2 : f32 to vector<8x1xf32>
    %5 = arith.divf %3, %4 : vector<8x1xf32>
    %c0_3 = arith.constant 0 : index
    %c0_4 = arith.constant 0 : index
    %6 = vector.load %arg1[%c0_3, %c0_4] : memref<8x4xf32, #tpu.memory_space<vmem>>, vector<8x4xf32>
    %7 = vector.broadcast %5 : vector<8x1xf32> to vector<8x4xf32>
    %8 = arith.mulf %6, %7 : vector<8x4xf32>
    %c0_5 = arith.constant 0 : index
    %c0_6 = arith.constant 0 : index
    %9 = vector.load %arg2[%c0_5, %c0_6] : memref<8x4xf32, #tpu.memory_space<vmem>>, vector<8x4xf32>
    %10 = arith.addf %8, %9 : vector<8x4xf32>
    %cst_7 = arith.constant 0.000000e+00 : f32
    %11 = vector.broadcast %cst_7 : f32 to vector<8x4xf32>
    %12 = arith.maximumf %10, %11 : vector<8x4xf32>
    %c0_8 = arith.constant 0 : index
    %c0_9 = arith.constant 0 : index
    %13 = vector.load %arg4[%c0_8, %c0_9] : memref<8x8xf32, #tpu.memory_space<vmem>>, vector<8x8xf32>
    %c0_10 = arith.constant 0 : index
    %c0_11 = arith.constant 0 : index
    %c0_12 = arith.constant 0 : index
    %14 = vector.load %arg3[%c0_10, %c0_11, %c0_12] : memref<4x8x8xf32, #tpu.memory_space<vmem>>, vector<1x8x8xf32>
    %15 = vector.shape_cast %14 : vector<1x8x8xf32> to vector<8x8xf32>
    %16 = vector.extract_strided_slice %12 {offsets = [0, 0], sizes = [8, 1], strides = [1, 1]} : vector<8x4xf32> to vector<8x1xf32>
    %17 = vector.broadcast %16 : vector<8x1xf32> to vector<8x8xf32>
    %18 = arith.mulf %15, %17 : vector<8x8xf32>
    %19 = arith.addf %13, %18 : vector<8x8xf32>
    %c1 = arith.constant 1 : index
    %c0_13 = arith.constant 0 : index
    %c0_14 = arith.constant 0 : index
    %20 = vector.load %arg3[%c1, %c0_13, %c0_14] : memref<4x8x8xf32, #tpu.memory_space<vmem>>, vector<1x8x8xf32>
    %21 = vector.shape_cast %20 : vector<1x8x8xf32> to vector<8x8xf32>
    %22 = vector.extract_strided_slice %12 {offsets = [0, 1], sizes = [8, 1], strides = [1, 1]} : vector<8x4xf32> to vector<8x1xf32>
    %23 = vector.broadcast %22 : vector<8x1xf32> to vector<8x8xf32>
    %24 = arith.mulf %21, %23 : vector<8x8xf32>
    %25 = arith.addf %19, %24 : vector<8x8xf32>
    %c2 = arith.constant 2 : index
    %c0_15 = arith.constant 0 : index
    %c0_16 = arith.constant 0 : index
    %26 = vector.load %arg3[%c2, %c0_15, %c0_16] : memref<4x8x8xf32, #tpu.memory_space<vmem>>, vector<1x8x8xf32>
    %27 = vector.shape_cast %26 : vector<1x8x8xf32> to vector<8x8xf32>
    %28 = vector.extract_strided_slice %12 {offsets = [0, 2], sizes = [8, 1], strides = [1, 1]} : vector<8x4xf32> to vector<8x1xf32>
    %29 = vector.broadcast %28 : vector<8x1xf32> to vector<8x8xf32>
    %30 = arith.mulf %27, %29 : vector<8x8xf32>
    %31 = arith.addf %25, %30 : vector<8x8xf32>
    %c3 = arith.constant 3 : index
    %c0_17 = arith.constant 0 : index
    %c0_18 = arith.constant 0 : index
    %32 = vector.load %arg3[%c3, %c0_17, %c0_18] : memref<4x8x8xf32, #tpu.memory_space<vmem>>, vector<1x8x8xf32>
    %33 = vector.shape_cast %32 : vector<1x8x8xf32> to vector<8x8xf32>
    %34 = vector.extract_strided_slice %12 {offsets = [0, 3], sizes = [8, 1], strides = [1, 1]} : vector<8x4xf32> to vector<8x1xf32>
    %35 = vector.broadcast %34 : vector<8x1xf32> to vector<8x8xf32>
    %36 = arith.mulf %33, %35 : vector<8x8xf32>
    %37 = arith.addf %31, %36 : vector<8x8xf32>
    %cst_19 = arith.constant dense<0.000000e+00> : vector<8xf32>
    %38 = vector.multi_reduction <add>, %37, %cst_19 [1] : vector<8x8xf32> to vector<8xf32>
    %39 = vector.shape_cast %38 : vector<8xf32> to vector<8x1xf32>
    %cst_20 = arith.constant 8.000000e+00 : f32
    %40 = vector.broadcast %cst_20 : f32 to vector<8x1xf32>
    %41 = arith.divf %39, %40 : vector<8x1xf32>
    %42 = vector.broadcast %41 : vector<8x1xf32> to vector<8x8xf32>
    %43 = arith.subf %37, %42 : vector<8x8xf32>
    %44 = arith.mulf %43, %43 : vector<8x8xf32>
    %cst_21 = arith.constant dense<0.000000e+00> : vector<8xf32>
    %45 = vector.multi_reduction <add>, %44, %cst_21 [1] : vector<8x8xf32> to vector<8xf32>
    %46 = vector.shape_cast %45 : vector<8xf32> to vector<8x1xf32>
    %cst_22 = arith.constant 8.000000e+00 : f32
    %47 = vector.broadcast %cst_22 : f32 to vector<8x1xf32>
    %48 = arith.divf %46, %47 : vector<8x1xf32>
    %49 = vector.broadcast %41 : vector<8x1xf32> to vector<8x8xf32>
    %50 = arith.subf %37, %49 : vector<8x8xf32>
    %cst_23 = arith.constant 9.99999974E-6 : f32
    %51 = vector.broadcast %cst_23 : f32 to vector<8x1xf32>
    %52 = arith.addf %48, %51 : vector<8x1xf32>
    %53 = math.rsqrt %52 : vector<8x1xf32>
    %54 = vector.broadcast %53 : vector<8x1xf32> to vector<8x8xf32>
    %55 = arith.mulf %50, %54 : vector<8x8xf32>
    %c0_24 = arith.constant 0 : index
    %c0_25 = arith.constant 0 : index
    %56 = vector.load %arg5[%c0_24, %c0_25] : memref<1x8xf32, #tpu.memory_space<vmem>>, vector<1x8xf32>
    %57 = vector.broadcast %56 : vector<1x8xf32> to vector<8x8xf32>
    %58 = arith.mulf %55, %57 : vector<8x8xf32>
    %c0_26 = arith.constant 0 : index
    %c0_27 = arith.constant 0 : index
    %59 = vector.load %arg6[%c0_26, %c0_27] : memref<1x8xf32, #tpu.memory_space<vmem>>, vector<1x8xf32>
    %60 = vector.broadcast %59 : vector<1x8xf32> to vector<8x8xf32>
    %61 = arith.addf %58, %60 : vector<8x8xf32>
    %cst_28 = arith.constant dense<0xFF800000> : vector<8xf32>
    %62 = vector.multi_reduction <maximumf>, %61, %cst_28 [1] : vector<8x8xf32> to vector<8xf32>
    %63 = vector.shape_cast %62 : vector<8xf32> to vector<8x1xf32>
    %64 = vector.broadcast %63 : vector<8x1xf32> to vector<8x8xf32>
    %65 = arith.cmpf oge, %61, %64 : vector<8x8xf32>
    %cst_29 = arith.constant 0xFF800000 : f32
    %66 = vector.broadcast %cst_29 : f32 to vector<8x8xf32>
    %67 = arith.select %65, %66, %61 : vector<8x8xi1>, vector<8x8xf32>
    %cst_30 = arith.constant dense<0xFF800000> : vector<8xf32>
    %68 = vector.multi_reduction <maximumf>, %67, %cst_30 [1] : vector<8x8xf32> to vector<8xf32>
    %69 = vector.shape_cast %68 : vector<8xf32> to vector<8x1xf32>
    %70 = vector.broadcast %69 : vector<8x1xf32> to vector<8x8xf32>
    %71 = arith.cmpf oge, %67, %70 : vector<8x8xf32>
    %cst_31 = arith.constant 0xFF800000 : f32
    %72 = vector.broadcast %cst_31 : f32 to vector<8x8xf32>
    %73 = arith.select %71, %72, %67 : vector<8x8xi1>, vector<8x8xf32>
    %cst_32 = arith.constant dense<0xFF800000> : vector<8xf32>
    %74 = vector.multi_reduction <maximumf>, %73, %cst_32 [1] : vector<8x8xf32> to vector<8xf32>
    %75 = vector.shape_cast %74 : vector<8xf32> to vector<8x1xf32>
    %76 = vector.broadcast %75 : vector<8x1xf32> to vector<8x8xf32>
    %77 = arith.cmpf oge, %73, %76 : vector<8x8xf32>
    %cst_33 = arith.constant 0xFF800000 : f32
    %78 = vector.broadcast %cst_33 : f32 to vector<8x8xf32>
    %79 = arith.select %77, %78, %73 : vector<8x8xi1>, vector<8x8xf32>
    %cst_34 = arith.constant dense<0xFF800000> : vector<8xf32>
    %80 = vector.multi_reduction <maximumf>, %79, %cst_34 [1] : vector<8x8xf32> to vector<8xf32>
    %81 = vector.shape_cast %80 : vector<8xf32> to vector<8x1xf32>
    %82 = vector.broadcast %81 : vector<8x1xf32> to vector<8x8xf32>
    %83 = arith.cmpf oge, %61, %82 : vector<8x8xf32>
    %cst_35 = arith.constant 0xFF800000 : f32
    %84 = vector.broadcast %cst_35 : f32 to vector<8x8xf32>
    %85 = arith.select %83, %61, %84 : vector<8x8xi1>, vector<8x8xf32>
    %cst_36 = arith.constant dense<0xFF800000> : vector<8xf32>
    %86 = vector.multi_reduction <maximumf>, %85, %cst_36 [1] : vector<8x8xf32> to vector<8xf32>
    %87 = vector.shape_cast %86 : vector<8xf32> to vector<8x1xf32>
    %88 = vector.broadcast %87 : vector<8x1xf32> to vector<8x8xf32>
    %89 = arith.subf %85, %88 : vector<8x8xf32>
    %90 = math.exp %89 : vector<8x8xf32>
    %cst_37 = arith.constant dense<0.000000e+00> : vector<8xf32>
    %91 = vector.multi_reduction <add>, %90, %cst_37 [1] : vector<8x8xf32> to vector<8xf32>
    %92 = vector.shape_cast %91 : vector<8xf32> to vector<8x1xf32>
    %93 = vector.broadcast %92 : vector<8x1xf32> to vector<8x8xf32>
    %94 = arith.divf %90, %93 : vector<8x8xf32>
    %cst_38 = arith.constant dense<0.000000e+00> : vector<8x160xf32>
    %95 = tpu.matmul %94, %1, %cst_38 {dimension_numbers = #tpu.dot_dimension_numbers<[1], [0], [0], [1], [0, 0, 1, 1], [], []>} : vector<8x8xf32>, vector<8x160xf32>, vector<8x160xf32> -> vector<8x160xf32>
    %96 = arith.addf %95, %1 : vector<8x160xf32>
    %c0_39 = arith.constant 0 : index
    %c0_40 = arith.constant 0 : index
    %c0_41 = arith.constant 0 : index
    %97 = vector.load %arg8[%c0_39, %c0_40, %c0_41] : memref<1x8x160xf32, #tpu.memory_space<vmem>>, vector<1x8x160xf32>
    %98 = vector.shape_cast %97 : vector<1x8x160xf32> to vector<8x160xf32>
    %99 = vector.shape_cast %96 : vector<8x160xf32> to vector<1x8x160xf32>
    tpu.vector_store %arg8[%c0_39, %c0_40, %c0_41], %99 {strides = array<i32>} : memref<1x8x160xf32, #tpu.memory_space<vmem>>, vector<1x8x160xf32>,
    return
  }
  func.func @transform_0(%arg0: i32) -> (i32, i32) {
    %c0_i32 = arith.constant 0 : i32
    %c0_i32_0 = arith.constant 0 : i32
    %c0_i32_1 = arith.constant 0 : i32
    return %c0_i32, %c0_i32_0 : i32, i32
  }
  func.func @transform_1(%arg0: i32) -> (i32, i32) {
    %c0_i32 = arith.constant 0 : i32
    %c0_i32_0 = arith.constant 0 : i32
    %c0_i32_1 = arith.constant 0 : i32
    return %c0_i32, %c0_i32_0 : i32, i32
  }
  func.func @transform_2(%arg0: i32) -> (i32, i32, i32) {
    %c0_i32 = arith.constant 0 : i32
    %c0_i32_0 = arith.constant 0 : i32
    %c0_i32_1 = arith.constant 0 : i32
    %c0_i32_2 = arith.constant 0 : i32
    return %c0_i32, %c0_i32_0, %c0_i32_1 : i32, i32, i32
  }
  func.func @transform_3(%arg0: i32) -> (i32, i32) {
    %c0_i32 = arith.constant 0 : i32
    %c0_i32_0 = arith.constant 0 : i32
    %c0_i32_1 = arith.constant 0 : i32
    return %c0_i32, %c0_i32_0 : i32, i32
  }
  func.func @transform_4(%arg0: i32) -> (i32, i32) {
    %c0_i32 = arith.constant 0 : i32
    %c0_i32_0 = arith.constant 0 : i32
    %c0_i32_1 = arith.constant 0 : i32
    return %c0_i32, %c0_i32_0 : i32, i32
  }
  func.func @transform_5(%arg0: i32) -> (i32, i32) {
    %c0_i32 = arith.constant 0 : i32
    %c0_i32_0 = arith.constant 0 : i32
    %c0_i32_1 = arith.constant 0 : i32
    return %c0_i32, %c0_i32_0 : i32, i32
  }
  func.func @transform_6(%arg0: i32) -> (i32, i32, i32) {
    %c0_i32 = arith.constant 0 : i32
    %c0_i32_0 = arith.constant 0 : i32
    %c0_i32_1 = arith.constant 0 : i32
    return %arg0, %c0_i32, %c0_i32_0 : i32, i32, i32
  }
  func.func @transform_7(%arg0: i32) -> (i32, i32, i32) {
    %c0_i32 = arith.constant 0 : i32
    %c0_i32_0 = arith.constant 0 : i32
    %c0_i32_1 = arith.constant 0 : i32
    return %arg0, %c0_i32, %c0_i32_0 : i32, i32, i32
  }
}

</mosaic_0001>

<bundles_post_ra>
// kernel: tpu_custom_call.1
= control target key start
LH: loop header
LB: loop body
LE: loop exit
PB: predicated region body
PF: predicated region fallthrough
CT: control target
= control target key end

     0   :  { %12 = vsyncpa [#allocation3], 0  ;;  %s966_s0 = inlined_call_operand.vmem [shape: f32[8,4], index: 0, kind: input, shape index: {}]   ;;  %s967_s1 = inlined_call_operand.vmem [shape: f32[8,4], index: 1, kind: input, shape index: {}]   ;;  %s968_s2 = inlined_call_operand.hbm [shape: f32[4,8,8], index: 2, kind: input, shape index: {}]   ;;  %s969_s3 = inlined_call_operand.vmem [shape: f32[8,8], index: 3, kind: input, shape index: {}]   ;;  %s970_s4 = inlined_call_operand.vmem [shape: f32[1,8], index: 4, kind: input, shape index: {}]   ;;  %s971_s5 = inlined_call_operand.vmem [shape: f32[1,8], index: 5, kind: input, shape index: {}]   ;;  %s972_s6 = inlined_call_operand.vmem [shape: f32[2,8,160], index: 6, kind: input, shape index: {}]   ;;  %s973_s7 = inlined_call_operand.hbm [shape: f32[2,8,160], index: 7, kind: output, shape index: {}]  }
   0x1   :  { %13 = vsyncpa [#allocation4], 0 }
   0x2   :  { %15 = vsyncpa [#allocation4 + $0x1], 0  ;;  %s795_s24 = smov 0   ;;  %s797_s25 = smov 0  }
   0x3   :  { %s799_s26 = smov 0   ;;  %s801_s27 = smov 0  }
   0x4 LB: > { %s816_s28 = sadd.s32 4294967295, %s744_s27   ;;  %s563_s29 = sadd.s32 4294967294, %s744_s27   ;;  %s744_s27 = sphi %s801_s27, %s989_s27   ;;  %s740_s26 = sphi %s799_s26, %s988_s26   ;;  %s736_s25 = sphi %s797_s25, %s987_s25   ;;  %s732_s24 = sphi %s795_s24, %s986_s24  }
   0x5   : > { %s820_s30 = sadd.s32 1, %s744_s27   ;;  %s180_s8 = sadd.s32 1, %s740_s26 }
   0x6   : > { %s177_s9 = ssub.s32 %s744_s27, %s820_s30  ;;  %p190_p0 = scmp.ne.s32.totalorder %s740_s26, %s736_s25 }
   0x7   : > { %p178_p1 = scmp.eq.s32.totalorder %s177_s9, 0  ;;  %p191_p2 = scmp.eq.s32.totalorder %s816_s28, 1 }
   0x8   : > { %p196_p3 = scmp.ne.s32.totalorder %s736_s25, %s732_s24  ;;  %p197_p4 = scmp.eq.s32.totalorder %s563_s29, 1 }
   0x9   : > { %s831_s10 = scalar_select %p178_p1, %s740_s26, %s180_s8  }
   0xa   : > { %p833_p5 = por %p191_p2, %p190_p0  ;;  %p837_p6 = por %p197_p4, %p196_p3 }
   0xb   : > { %p564_p7 = scmp.ge.s32.totalorder %s744_s27, 1  ;;  %p204_p8 = scmp.lt.s32.totalorder %s744_s27, 3 }
   0xc   : > { %s977_s11 = scalar_select %p833_p5, 1, 0 }
   0xd   : > { %s978_s12 = scalar_select %p837_p6, 1, 0 }
   0xe   : > { %p974_p9 = scmp.eq.s32.totalorder %s816_s28, 0  ;;  %p844_p10 = pnand %p564_p7, %p204_p8 }
   0xf   : > { %s746_s14 = smov [#allocation2]   ;;  %s650_s19 = scalar_lea.hbm %s968_s2, 512 }
  0x10   : > { %s979_s13 = scalar_select %p844_p10, 1, 0 }
  0x11   : > { %s222_s15 = sshll.u32 %s746_s14, 4  ;;  %p588_p11 = pneg %p844_p10  ;;  %s223_s15 = int_to_ptr.vmem [resolvable:$true] %s222_s15 }
  0x12   : > { %p651_p13 = scmp.ne.s32.totalorder %s968_s2, %s650_s19  ;;  %p657_p3 = scmp.lt.u32.totalorder %s650_s19, %s968_s2 }
  0x13   : > { %p852_p12 = pnand %p974_p9, %p588_p11 }
  0x15   : > { %p652_p0 = pneg %p852_p12 }
  0x17   : > { %p653_p1 = pnand %p652_p0, %p651_p13 }
  0x19   : > { %p654_p2 = pneg %p653_p1 }
  0x1b   : > { %p659_p4 = pnand %p657_p3, %p654_p2 }
  0x1d   : > { %662 = shalt.err (!%p659_p4)
}
  0x1e   : > { %s663_s29 = scalar_lea.vmem %s223_s15, 512  ;;  %p671_p9 = scmp.lt.s32.totalorder %s223_s15, %s223_s15 }
  0x1f   : > { %p664_p7 = scmp.ne.s32.totalorder %s223_s15, %s663_s29  ;;  %p672_p6 = scmp.lt.s32.totalorder %s663_s29, %s663_s29 }
  0x21   : > { %p666_p8 = pnand %p664_p7, %p652_p0  ;;  %p673_p5 = por %p672_p6, %p671_p9 }
  0x23   : > { %p667_p11 = pneg %p666_p8 }
  0x25   : > { %p674_p10 = pnand %p673_p5, %p667_p11 }
  0x27   : > { %677 = shalt.err (!%p674_p10)
}
  0x28   : > { %s747_s8 = smov 128   ;;  %s748_s9 = smov 8  }
  0x29   : > { %591 = dma.hbm_to_vmem [thread:$0]  (!%p852_p12), %s968_s2, 512, %s223_s15, [#allocation3], %s747_s8, %s747_s8, %s748_s9  }
  0x2a   : > { %p981_p13 = scmp.ne.s32.totalorder %s979_s13, 0 }
  0x2b   : > { %p982_p1 = scmp.eq.s32.totalorder (!%p981_p13), %s816_s28, 0 }
  0x2c   : > { %255 = sbr.rel (%p981_p13) target bundleno = 1790 (0x6fe), region = 48 }
  0x33   : > { %723 = dma.done.wait (%p982_p1), [#allocation3], 512   ;;  %p983_p0 = pmov %p982_p1 }
  0x34   : > { %p287_p5 = scmp.lt.s32.totalorder %s816_s28, 1  ;;  %vm294_vm0 = vcmask 261120   ;;  %v749_v4 = vmov 1   ;;  %v750_v5 = vmov 0   ;;  %v301_v6 = vld [vmem:[%s966_s0] sm:$0xff]  ;;  %v751_v13 = vmov 2  }
  0x35   : > { %725 = vsyncadd (%p983_p0), [#allocation3], 4294966784  ;;  %640 = vset.pattern.permute.xlu1 %v749_v4  ;;  %639 = vset.pattern.permute.xlu0 %v750_v5  ;;  %v303_v9 = vld [vmem:[%s967_s1] sm:$0xff]  ;;  %v752_v14 = vmov 3   ;;  %v307_v15 = vld [vmem:[#allocation2] sm:$0xff]  ;;  %vm339_vm1 = vcmask 64512  }
  0x36   : > { %s288_s18 = scalar_select %p287_p5, %s816_s28, 1  ;;  %v306_v17 = vld [vmem:[%s969_s3] sm:$0xff]  ;;  %v316_v20 = vld [vmem:[#allocation2 + $0x8] sm:$0xff]  ;;  %v324_v22 = vld [vmem:[#allocation2 + $0x10] sm:$0xff] }
  0x37   : > { %v332_v27 = vld [vmem:[#allocation2 + $0x18] sm:$0xff]  ;;  %s581_s16 = sshll.u32 %s816_s28, 8  ;;  %p984_p9 = scmp.ne.s32.totalorder %s977_s11, 0 }
  0x38   : > { %s580_s19 = sshll.u32 %s288_s18, 4  ;;  %v572_v42 = vld [vmem:[%s970_s4] ss:$0 sm:$0xff]  ;;  %s923_s23 = scalar_lea.hbm %s973_s7, %s581_s16 }
  0x39   : > { %s291_s21 = scalar_lea.vmem %s972_s6, %s580_s19  ;;  %v573_v44 = vld [vmem:[%s971_s5] ss:$0 sm:$0xff]  ;;  %s284_s19 = sand.u32 1, %s736_s25  }
  0x3a   : > { %v883_v0 = vld [vmem:[%s291_s21] sm:$0xff]  ;;  %v885_v1 = vld [vmem:[%s291_s21 + $0x8] sm:$0xff]  ;;  %s569_s20 = sshll.u32 %s284_s19, 4  ;;  %s478_s28 = scalar_lea.sflag [#allocation4], %s284_s19 }
  0x3b   : > { %v295_v2 = vsel %vm294_vm0, %v885_v1, 0.0  ;;  %404 = vmatprep.subr.mxu0 %v885_v1  ;;  %s286_s21 = scalar_lea.vmem [#allocation5], %s569_s20  ;;  %s754_s8 = smov [#allocation5]  }
  0x3c   : > { %v296_v3 = vadd.f32 %v295_v2, %v883_v0  ;;  %405 = vmatpush1.msra.mxu0 %v883_v0  ;;  %s492_s13 = sshll.u32 %s286_s21, 4  ;;  %s682_s9 = sshll.u32 %s754_s8, 4  ;;  %s925_s13 = int_to_ptr.vmem [resolvable:$true] %s492_s13  ;;  %s683_s9 = int_to_ptr.vmem [resolvable:$false] %s682_s9 }
  0x3d   : > { %s678_s29 = scalar_lea.vmem %s925_s13, 256  ;;  %s684_s14 = scalar_lea.vmem %s683_s9, 512 }
  0x3e   : > { %297 = vadd.xlane.f32.xlu0 %v296_v3  ;;  %v753_v3 = vmov 0.0   ;;  %p679_p6 = scmp.ne.s32.totalorder %s925_s13, %s678_s29  ;;  %p685_p2 = scmp.lt.s32.totalorder %s925_s13, %s683_s9 }
  0x3f   : > { %468 = vmatprep.mubr.f32.mxu0 %v753_v3  ;;  %p686_p3 = scmp.lt.s32.totalorder %s684_s14, %s678_s29 }
  0x40   : > { %p680_p10 = pnand %p679_p6, %p984_p9 }
  0x41   : > { %p687_p4 = por %p686_p3, %p685_p2 }
  0x42   : > { %p681_p12 = pneg %p680_p10 }
  0x44   : > { %p688_p7 = pnand %p687_p4, %p681_p12 }
  0xcb   : > { %v298_v7 = vpop.xlane.xlu0 %297 }
  0xcc   : > { %v300_v8 = vmul.f32 0.00625, %v298_v7 }
  0xce   : > { %v302_v10 = vmul.f32 %v301_v6, %v300_v8 }
  0xd0   : > { %v304_v11 = vadd.f32 %v303_v9, %v302_v10 }
  0xd2   : > { %v305_v12 = vmax.f32 %v304_v11, 0.0 }
  0xd4   : > { %318 = vperm.xlu1 %640, %v305_v12   ;;  %310 = vperm.xlu0 %639, %v305_v12  }
  0xd8   : > { %641 = vset.pattern.permute.xlu1 %v751_v13  ;;  %643 = vset.pattern.permute.xlu0 %v752_v14 }
  0xd9   : > { %326 = vperm.xlu1 %641, %v305_v12  }
  0xdd   : > { %642 = vset.pattern.permute.xlu1 %v752_v14 }
  0xde   : > { %334 = vperm.xlu1 %642, %v305_v12  }
 0x153   : > { %v319_v16 = vpop.permute.xlu1 %318  ;;  %v311_v18 = vpop.permute.xlu0 %310 }
 0x154   : > { %v313_v19 = vmul.f32 %v311_v18, %v307_v15  ;;  %v321_v23 = vmul.f32 %v319_v16, %v316_v20 }
 0x156   : > { %v314_v21 = vadd.f32 %v313_v19, %v306_v17 }
 0x158   : > { %v327_v24 = vpop.permute.xlu1 %326  ;;  %v322_v25 = vadd.f32 %v321_v23, %v314_v21 }
 0x159   : > { %v329_v26 = vmul.f32 %v327_v24, %v324_v22 }
 0x15b   : > { %v330_v29 = vadd.f32 %v329_v26, %v322_v25 }
 0x15d   : > { %v335_v28 = vpop.permute.xlu1 %334 }
 0x15e   : > { %v337_v30 = vmul.f32 %v335_v28, %v332_v27 }
 0x160   : > { %v338_v31 = vadd.f32 %v337_v30, %v330_v29 }
 0x162   : > { %v340_v32 = vsel %vm339_vm1, %v338_v31, 0.0 }
 0x163   : > { %341 = vadd.xlane.f32.xlu1 %v340_v32 }
 0x1f0   : > { %v342_v33 = vpop.xlane.xlu1 %341 }
 0x1f1   : > { %v344_v34 = vmul.f32 0.125, %v342_v33 }
 0x1f3   : > { %v345_v35 = vsub.f32 %v338_v31, %v344_v34 }
 0x1f5   : > { %v346_v36 = vmul.f32 %v345_v35, %v345_v35 }
 0x1f7   : > { %v347_v37 = vsel %vm339_vm1, %v346_v36, 0.0 }
 0x1f8   : > { %348 = vadd.xlane.f32.xlu0 %v347_v37 }
 0x285   : > { %v349_v38 = vpop.xlane.xlu0 %348 }
 0x286   : > { %v350_v39 = vmul.f32 0.125, %v349_v38 }
 0x288   : > { %v351_v40 = vadd.f32 1e-05, %v350_v39 }
 0x28a   : > { %644 = vrsqrt.f32 %v351_v40 }
 0x294   : > { %v645_v41 = vpop.eup %644 }
 0x295   : > { %v353_v43 = vmul.f32 %v645_v41, %v345_v35 }
 0x297   : > { %v361_v45 = vmul.f32 %v572_v42, %v353_v43 }
 0x299   : > { %v369_v46 = vadd.f32 %v573_v44, %v361_v45 }
 0x29b   : > { %v370_v47 = vsel %vm339_vm1, %v369_v46, -inf }
 0x29c   : > { %371 = vmax.xlane.f32.xlu1 %v370_v47 }
 0x329   : > { %v372_v48 = vpop.xlane.xlu1 %371 }
 0x32a   : > { %vm373_vm2 = vcmp.ge.f32.partialorder %v369_v46, %v372_v48 }
 0x32b   : > { %v374_v49 = vsel %vm373_vm2, -inf, %v369_v46 }
 0x32c   : > { %v375_v50 = vsel %vm339_vm1, %v374_v49, -inf }
 0x32d   : > { %376 = vmax.xlane.f32.xlu1 %v375_v50 }
 0x3ba   : > { %v377_v51 = vpop.xlane.xlu1 %376 }
 0x3bb   : > { %vm378_vm3 = vcmp.ge.f32.partialorder %v374_v49, %v377_v51 }
 0x3bc   : > { %v379_v52 = vsel %vm378_vm3, -inf, %v374_v49 }
 0x3bd   : > { %v380_v53 = vsel %vm339_vm1, %v379_v52, -inf }
 0x3be   : > { %381 = vmax.xlane.f32.xlu1 %v380_v53 }
 0x44b   : > { %v382_v54 = vpop.xlane.xlu1 %381 }
 0x44c   : > { %vm383_vm4 = vcmp.ge.f32.partialorder %v379_v52, %v382_v54 }
 0x44d   : > { %v384_v55 = vsel %vm383_vm4, -inf, %v379_v52 }
 0x44e   : > { %v385_v56 = vsel %vm339_vm1, %v384_v55, -inf }
 0x44f   : > { %386 = vmax.xlane.f32.xlu1 %v385_v56 }
 0x4dc   : > { %v387_v57 = vpop.xlane.xlu1 %386 }
 0x4dd   : > { %vm388_vm5 = vcmp.ge.f32.partialorder %v369_v46, %v387_v57 }
 0x4de   : > { %v389_v58 = vsel %vm388_vm5, %v369_v46, -inf }
 0x4df   : > { %v390_v59 = vsel %vm339_vm1, %v389_v58, -inf }
 0x4e0   : > { %391 = vmax.xlane.f32.xlu1 %v390_v59 }
 0x56d   : > { %v392_v60 = vpop.xlane.xlu1 %391 }
 0x56e   : > { %v393_v61 = vsub.f32 %v389_v58, %v392_v60 }
 0x570   : > { %v394_v62 = vmul.f32 1.442695, %v393_v61 }
 0x572   : > { %646 = vpow2.f32 %v394_v62 }
 0x57c   : > { %v647_v63 = vpop.eup %646 }
 0x57d   : > { %v396_v2 = vsel %vm339_vm1, %v647_v63, 0.0 }
 0x57e   : > { %397 = vadd.xlane.f32.xlu1 %v396_v2 }
 0x60b   : > { %v398_v4 = vpop.xlane.xlu1 %397 }
 0x60c   : > { %648 = vrcp.f32 %v398_v4 }
 0x616   : > { %v649_v5 = vpop.eup %648 }
 0x617   : > { %v400_v6 = vmul.f32 %v649_v5, %v647_v63 }
 0x619   : > { %574 = vmatmul.mubr.msk.f32.vlgmr.msra.gmra.mrb[0].mxu0 %vm339_vm1, %v400_v6 }
 0x6ec   : > { %v470_v7 = vpop.f32.mrb[0].mxu0 }
 0x6ed   : > { %v471_v8 = vadd.f32 %v470_v7, %v883_v0  ;;  %v472_v9 = vpop.f32.mrb[1].mxu0 }
 0x6ee   : > { %v473_v10 = vadd.f32 %v472_v9, %v885_v1 }
 0x6ef   : > { %475 = vst [vmem:[%s286_s21] sm:$0xff] %v471_v8 }
 0x6f0   : > { %476 = vst.msk [vmem:[%s286_s21 + $0x8] sm:$0xff] %vm294_vm0, %v473_v10 }
 0x6f1   : > { %691 = shalt.err (!%p688_p7)
}
 0x6f2   : > { %s692_s17 = scalar_lea.hbm %s923_s23, 256  ;;  %s696_s20 = scalar_lea.hbm %s973_s7, 512 }
 0x6f3   : > { %p693_p8 = scmp.ne.s32.totalorder %s923_s23, %s692_s17  ;;  %p697_p1 = scmp.lt.u32.totalorder %s923_s23, %s973_s7 }
 0x6f4   : > { %p698_p0 = scmp.lt.u32.totalorder %s696_s20, %s692_s17  ;;  %p700_p6 = scmp.lt.u32.totalorder %s692_s17, %s923_s23 }
 0x6f5   : > { %p694_p11 = pnand %p693_p8, %p984_p9 }
 0x6f6   : > { %p699_p5 = por %p698_p0, %p697_p1 }
 0x6f7   : > { %p695_p13 = pneg %p694_p11 }
 0x6f8   : > { %p701_p10 = por %p700_p6, %p699_p5 }
 0x6fa   : > { %p702_p12 = pnand %p701_p10, %p695_p13 }
 0x6fc   : > { %705 = shalt.err (!%p702_p12)
}
 0x6fd   : > { %586 = dma.vmem_to_hbm [thread:$0]  (%p984_p9), %s925_s13, 256, %s923_s23, %s478_s28  }
 0x6fe PF: > { %p598_p2 = scmp.ge.s32.totalorder %s744_s27, 2  ;;  %s504_s15 = sand.u32 1, %s732_s24  }
 0x6ff   : > { %p985_p3 = scmp.ne.s32.totalorder %s978_s12, 0  ;;  %s505_s22 = scalar_lea.sflag [#allocation4], %s504_s15 }
 0x701   : > { %p593_p4 = pnand %p598_p2, %p985_p3 }
 0x703   : > { %727 = dma.done.wait (!%p593_p4), %s505_s22, 256  }
 0x704   : > { %729 = vsyncadd (!%p593_p4), %s505_s22, 4294967040  ;;  %p18_p7 = scmp.ge.s32.totalorder %s820_s30, 4   ;;  %s986_s24 = smov %s736_s25 }
 0x705   : > { %s987_s25 = smov %s740_s26  ;;  %s988_s26 = smov %s831_s10 }
 0x706   : > { %s989_s27 = smov %s820_s30  ;;  %20 = sbr.rel (!%p18_p7) target bundleno = 4 (0x4), region = 91 }
 0x70d   :  { %510 = vsyncpa [#allocation3], 1 }
 0x70e   :  { %512 = vsyncpa [#allocation3 + $0x1], 1 }
 0x70f   :  { %513 = vsyncpa [#allocation4], 1 }
 0x710   :  { %515 = vsyncpa [#allocation4 + $0x1], 1 }

</bundles_post_ra>
